<compile_context>
chip_gen: v6e
topology: v6e:2x2x1
jax: 0.10.0
libtpu: 0.0.40
codegen_flags: <defaults>
</compile_context>

<pallas_src>
import functools
import numpy as np
import jax
import jax.numpy as jnp
from jax.experimental import pallas as pl
from jax.experimental.pallas import tpu as pltpu


_TW_MAX = 512    # output-column tile (multiple of 128) for large images
_HW_MAX = 8192   # flattened-spatial tile for the n_stages==0 channel-mix path


@functools.lru_cache(maxsize=1)
def _vmem_limit_bytes() -> int:
    # Chip-aware VMEM budget: ~75% of physical (≈96 MiB on v5e/v6e, ≈48 MiB on v7x).
    try:
        cap = int(pltpu.get_tpu_info().vmem_capacity_bytes)
        return max(32 * 1024 * 1024, (cap * 3) // 4)
    except Exception:
        return 48 * 1024 * 1024  # safe everywhere (<= v7x physical 64 MiB)


def _pick_tile(total: int, max_tile: int):
    if total <= max_tile:
        return total, 1
    return max_tile, -(-total // max_tile)


# --------------------------------------------------------------------------
# host side: PyTorch-equivalent bilinear interpolation matrix
# (align_corners=False, half-pixel centers, out_size = floor(in_size * scale))
# --------------------------------------------------------------------------
def bilinear_matrix(in_size: int, scale: float) -> np.ndarray:
    out_size = int(np.floor(in_size * scale))
    W = np.zeros((out_size, in_size), dtype=np.float32)
    for d in range(out_size):
        src = (d + 0.5) / scale - 0.5
        src = max(src, 0.0)
        i0 = min(int(np.floor(src)), in_size - 1)
        i1 = min(i0 + 1, in_size - 1)
        w1 = src - i0
        W[d, i0] += 1.0 - w1
        W[d, i1] += w1
    return W
    # TODO(synk): verify odd / non-divisible sizes against torch recompute_scale_factor semantics.


_MATRIX_CACHE: dict = {}


def composed_bilinear_matrix(in_size: int, scale: float, n_stages: int) -> np.ndarray:
    # Compose all stages into one exact matrix (each stage is linear); cached so
    # the host-side python loops run once per (size, scale, n_stages).
    key = (int(in_size), float(scale), int(n_stages))
    M = _MATRIX_CACHE.get(key)
    if M is None:
        M = np.eye(in_size, dtype=np.float32)
        size = in_size
        for _ in range(n_stages):
            Wk = bilinear_matrix(size, scale)
            M = Wk @ M
            size = Wk.shape[0]
        _MATRIX_CACHE[key] = M
    return M  # (out_size, in_size)


# --------------------------------------------------------------------------
# Pallas kernels
# --------------------------------------------------------------------------
def _resize_kernel(x_ref, wh_ref, wwt_ref, o_ref):
    # One (image, channel, Wo-tile) per grid step.
    # x_ref  : (1, 1, H, W)
    # wh_ref : (Ho, H)    composed height interpolation matrix
    # wwt_ref: (W, tw)    composed width interpolation matrix tile (pre-transposed)
    # o_ref  : (1, 1, Ho, tw)
    wh = wh_ref[...]
    t = jnp.dot(x_ref[0, 0], wwt_ref[...], preferred_element_type=jnp.float32)   # (H, tw)
    r = jnp.dot(wh, t.astype(wh.dtype), preferred_element_type=jnp.float32)      # (Ho, tw)
    o_ref[0, 0] = r.astype(o_ref.dtype)


def _resize_remap_kernel(x_ref, wh_ref, wwt_ref, wc_ref, o_ref):
    # Fused resize + 1x1-conv channel remap (bias=False).
    # x_ref  : (1, Cin*H, W)   one image; channel planes stacked along rows
    # wh_ref : (Ho, H)
    # wwt_ref: (W, tw)
    # wc_ref : (Cout, Cin)     f32, SMEM (read as scalars)
    # o_ref  : (1, Cout*Ho, tw)
    Ho, H = wh_ref.shape
    Cout, Cin = wc_ref.shape
    wh = wh_ref[...]
    wwt = wwt_ref[...]

    # Resize each input channel (per-channel width pass keeps the live f32
    # intermediate at H*tw instead of Cin*H*Wo).
    rs = []
    for c in range(Cin):
        t_c = jnp.dot(x_ref[0, c * H:(c + 1) * H, :], wwt,
                      preferred_element_type=jnp.float32)                         # (H, tw)
        rs.append(jnp.dot(wh, t_c.astype(wh.dtype),
                          preferred_element_type=jnp.float32))                    # (Ho, tw)

    # Fused 1x1 conv: Cout outermost, a single (Ho, tw) f32 plane accumulated in
    # place and written immediately (no (Cout, Ho, Wo) live accumulator).
    for co in range(Cout):
        acc = wc_ref[co, 0] * rs[0]
        for c in range(1, Cin):
            acc = acc + wc_ref[co, c] * rs[c]
        o_ref[0, co * Ho:(co + 1) * Ho, :] = acc.astype(o_ref.dtype)


def _channel_mix_kernel(x_ref, wc_ref, o_ref):
    # n_stages == 0 fast path: 1x1 conv only (one MXU matmul).
    # x_ref : (1, Cin, hw_tile)
    # wc_ref: (Cout, Cin)  f32, VMEM (MXU operand)
    # o_ref : (1, Cout, hw_tile)
    wc = wc_ref[...]
    o_ref[0] = jnp.dot(wc, x_ref[0].astype(wc.dtype),
                       preferred_element_type=jnp.float32).astype(o_ref.dtype)


# --------------------------------------------------------------------------
# pallas_call wrappers
# --------------------------------------------------------------------------
def _resize_call(x, wh, wwt, *, out_dtype):
    N, C, H, W = x.shape
    Ho = wh.shape[0]
    Wo = wwt.shape[1]
    tw, n_wt = _pick_tile(Wo, _TW_MAX)
    flops = int(2 * N * C * (H * W * Wo + Ho * H * Wo))
    bytes_accessed = int(x.dtype.itemsize * N * C * H * W
                         + np.dtype(out_dtype).itemsize * N * C * Ho * Wo
                         + wh.dtype.itemsize * (Ho * H + W * Wo))
    return pl.pallas_call(
        _resize_kernel,
        out_shape=jax.ShapeDtypeStruct((N, C, Ho, Wo), out_dtype),
        grid_spec=pltpu.PrefetchScalarGridSpec(
            num_scalar_prefetch=0,
            grid=(N, C, n_wt),
            in_specs=[
                pl.BlockSpec((1, 1, H, W), lambda n, c, j: (n, c, 0, 0)),  # resident across j
                pl.BlockSpec((Ho, H), lambda n, c, j: (0, 0)),
                pl.BlockSpec((W, tw), lambda n, c, j: (0, j)),
            ],
            out_specs=pl.BlockSpec((1, 1, Ho, tw), lambda n, c, j: (n, c, 0, j)),
        ),
        compiler_params=pltpu.CompilerParams(
            dimension_semantics=("parallel", "parallel", "parallel"),
            vmem_limit_bytes=_vmem_limit_bytes()),
        cost_estimate=pl.CostEstimate(flops=flops, transcendentals=0,
                                      bytes_accessed=bytes_accessed),
    )(x, wh, wwt)


def _resize_remap_call(xb, wh, wwt, wc, *, out_dtype):
    N, CH, W = xb.shape
    Ho, H = wh.shape
    Wo = wwt.shape[1]
    Cin = CH // H
    Cout = wc.shape[0]
    tw, n_wt = _pick_tile(Wo, _TW_MAX)
    flops = int(2 * N * (Cin * H * W * Wo + Cin * Ho * H * Wo + Cin * Cout * Ho * Wo))
    bytes_accessed = int(xb.dtype.itemsize * N * CH * W
                         + np.dtype(out_dtype).itemsize * N * Cout * Ho * Wo
                         + wh.dtype.itemsize * (Ho * H + W * Wo)
                         + wc.dtype.itemsize * Cout * Cin)
    return pl.pallas_call(
        _resize_remap_kernel,
        out_shape=jax.ShapeDtypeStruct((N, Cout * Ho, Wo), out_dtype),
        grid_spec=pltpu.PrefetchScalarGridSpec(
            num_scalar_prefetch=0,
            grid=(N, n_wt),
            in_specs=[
                pl.BlockSpec((1, CH, W), lambda n, j: (n, 0, 0)),       # resident across j
                pl.BlockSpec((Ho, H), lambda n, j: (0, 0)),
                pl.BlockSpec((W, tw), lambda n, j: (0, j)),
                pl.BlockSpec(memory_space=pltpu.MemorySpace.SMEM),      # (Cout, Cin) scalars
            ],
            out_specs=pl.BlockSpec((1, Cout * Ho, tw), lambda n, j: (n, 0, j)),
        ),
        compiler_params=pltpu.CompilerParams(
            dimension_semantics=("parallel", "parallel"),
            vmem_limit_bytes=_vmem_limit_bytes()),
        cost_estimate=pl.CostEstimate(flops=flops, transcendentals=0,
                                      bytes_accessed=bytes_accessed),
    )(xb, wh, wwt, wc)


def _channel_mix_call(x3, wc, *, out_dtype):
    N, Cin, HW = x3.shape
    Cout = wc.shape[0]
    thw, n_t = _pick_tile(HW, _HW_MAX)
    flops = int(2 * N * Cout * Cin * HW)
    bytes_accessed = int(x3.dtype.itemsize * N * Cin * HW
                         + np.dtype(out_dtype).itemsize * N * Cout * HW
                         + wc.dtype.itemsize * Cout * Cin)
    return pl.pallas_call(
        _channel_mix_kernel,
        out_shape=jax.ShapeDtypeStruct((N, Cout, HW), out_dtype),
        grid_spec=pltpu.PrefetchScalarGridSpec(
            num_scalar_prefetch=0,
            grid=(N, n_t),
            in_specs=[
                pl.BlockSpec((1, Cin, thw), lambda n, j: (n, 0, j)),
                pl.BlockSpec((Cout, Cin), lambda n, j: (0, 0)),
            ],
            out_specs=pl.BlockSpec((1, Cout, thw), lambda n, j: (n, 0, j)),
        ),
        compiler_params=pltpu.CompilerParams(
            dimension_semantics=("parallel", "parallel"),
            vmem_limit_bytes=_vmem_limit_bytes()),
        cost_estimate=pl.CostEstimate(flops=flops, transcendentals=0,
                                      bytes_accessed=bytes_accessed),
    )(x3, wc)


# --------------------------------------------------------------------------
# Module-equivalent wrapper
# --------------------------------------------------------------------------
class SpatialRescalerPallas:
    def __init__(self, n_stages=1, method="bilinear", multiplier=0.5,
                 in_channels=3, out_channels=None, bias=False,
                 compute_dtype=None, key=None):
        assert n_stages >= 0
        assert method == "bilinear", "only bilinear implemented here"
        # TODO(synk): other interpolation modes ('nearest', 'bicubic', 'area', ...) not implemented.
        assert not bias, "bias=False (module default) only"
        # TODO(synk): conv bias not implemented (module default is bias=False).
        self.n_stages = n_stages
        self.multiplier = multiplier
        self.in_channels = in_channels
        # compute_dtype=jnp.bfloat16 casts activations + interpolation weights for
        # the MXU (f32 accumulation kept) -> large speedup on v5e, ~2x on v6e/v7x.
        self.compute_dtype = compute_dtype
        self.remap_output = out_channels is not None
        if self.remap_output:
            # nn.Conv2d(in_channels, out_channels, 1, bias=False) default init
            key = jax.random.PRNGKey(0) if key is None else key
            bound = 1.0 / np.sqrt(in_channels)
            self.weight = jax.random.uniform(
                key, (out_channels, in_channels), dtype=jnp.float32,
                minval=-bound, maxval=bound)                       # (Cout, Cin)

    def __call__(self, x):
        N, C, H, W = x.shape
        out_dtype = x.dtype

        if self.n_stages == 0:
            if not self.remap_output:
                return x
            # fast path: no resize -> only the 1x1-conv channel mix (one MXU matmul)
            assert C == self.in_channels
            out = _channel_mix_call(x.reshape(N, C, H * W), self.weight,
                                    out_dtype=out_dtype)           # (N, Cout, H*W)
            return out.reshape(N, -1, H, W)

        cdt = self.compute_dtype if self.compute_dtype is not None else x.dtype
        # compose all stages into one exact interpolation matrix per axis (cached)
        wh = jnp.asarray(composed_bilinear_matrix(H, self.multiplier, self.n_stages)
                         ).astype(cdt)                             # (Ho, H)
        wwt = jnp.asarray(composed_bilinear_matrix(W, self.multiplier, self.n_stages).T
                          ).astype(cdt)                            # (W, Wo), pre-transposed
        Ho, Wo = wh.shape[0], wwt.shape[1]

        if self.remap_output:
            assert C == self.in_channels
            xb = x.reshape(N, C * H, W).astype(cdt)                # planes stacked along rows
            out = _resize_remap_call(xb, wh, wwt, self.weight, out_dtype=out_dtype)
            return out.reshape(N, -1, Ho, Wo)                      # (N, Cout, Ho, Wo)

        out = _resize_call(x.astype(cdt), wh, wwt, out_dtype=out_dtype)
        return out                                                  # (N, C, Ho, Wo)


# --------------------------------------------------------------------------
if __name__ == "__main__":
    key = jax.random.PRNGKey(0)
    kx, kw = jax.random.split(key)

    N, C_in, H, W = 2, 4, 16, 16
    C_out = 8
    x = jax.random.normal(kx, (N, C_in, H, W), dtype=jnp.float32)
    x_np = np.asarray(x)

    # --- fused path: 1 stage of 0.5x bilinear + 1x1-conv channel remap ------
    model = SpatialRescalerPallas(n_stages=1, method="bilinear", multiplier=0.5,
                                  in_channels=C_in, out_channels=C_out,
                                  bias=False, key=kw)
    y = jax.block_until_ready(model(x))
    # reference: for scale 0.5 on even sizes, torch bilinear == 2x2 average pool
    pooled = x_np.reshape(N, C_in, H // 2, 2, W // 2, 2).mean(axis=(3, 5))
    ref = np.einsum("oc,nchw->nohw", np.asarray(model.weight), pooled)
    assert y.shape == (N, C_out, H // 2, W // 2), y.shape
    assert np.allclose(np.asarray(y), ref, atol=1e-5, rtol=1e-5)

    # --- resize-only path: 2 composed stages, no channel remap --------------
    model2 = SpatialRescalerPallas(n_stages=2, method="bilinear", multiplier=0.5,
                                   in_channels=C_in, out_channels=None)
    y2 = jax.block_until_ready(model2(x))
    pooled2 = x_np.reshape(N, C_in, H // 4, 4, W // 4, 4).mean(axis=(3, 5))
    assert y2.shape == (N, C_in, H // 4, W // 4), y2.shape
    assert np.allclose(np.asarray(y2), pooled2, atol=1e-5, rtol=1e-5)

    # --- n_stages == 0 fast path: channel mix only ---------------------------
    model3 = SpatialRescalerPallas(n_stages=0, in_channels=C_in,
                                   out_channels=C_out, key=kw)
    y3 = jax.block_until_ready(model3(x))
    ref3 = np.einsum("oc,nchw->nohw", np.asarray(model3.weight), x_np)
    assert y3.shape == (N, C_out, H, W), y3.shape
    assert np.allclose(np.asarray(y3), ref3, atol=1e-5, rtol=1e-5)

    # --- bf16 compute path (v5e MXU optimization), loose tolerance -----------
    model4 = SpatialRescalerPallas(n_stages=1, multiplier=0.5, in_channels=C_in,
                                   out_channels=C_out, key=kw,
                                   compute_dtype=jnp.bfloat16)
    y4 = jax.block_until_ready(model4(x))
    assert y4.shape == (N, C_out, H // 2, W // 2), y4.shape
    assert y4.dtype == x.dtype
    assert np.allclose(np.asarray(y4), ref, atol=0.1, rtol=0.1)

    print("KERNEL_OK")
</pallas_src>

<mosaic_0001>
module attributes {stable_mosaic.version = 11 : i64} {
  func.func @_resize_remap_kernel(%arg0: i32, %arg1: i32, %arg2: memref<1x64x16xf32, #tpu.memory_space<vmem>>, %arg3: memref<8x16xf32, #tpu.memory_space<vmem>>, %arg4: memref<16x8xf32, #tpu.memory_space<vmem>>, %arg5: memref<8x4xf32, #tpu.memory_space<smem>>, %arg6: memref<1x64x8xf32, #tpu.memory_space<vmem>>) attributes {dimension_semantics = [#tpu.dimension_semantics<parallel>, #tpu.dimension_semantics<parallel>], iteration_bounds = array<i64: 2, 1>, scalar_prefetch = 0 : i64, scratch_operands = 0 : i64, tpu.core_type = #tpu.core_type<tc>, window_params = [{transform_indices = @transform_0, window_bounds = array<i64: 1, 64, 16>}, {pipeline_mode = #tpu.pipeline_mode<synchronous>, transform_indices = @transform_1, window_bounds = array<i64: 8, 16>}, {transform_indices = @transform_2, window_bounds = array<i64: 16, 8>}, {transform_indices = @transform_3, window_bounds = array<i64: 8, 4>}, {transform_indices = @transform_4, window_bounds = array<i64: 1, 64, 8>}]} {
    %c0 = arith.constant 0 : index
    %c0_0 = arith.constant 0 : index
    %0 = vector.load %arg3[%c0, %c0_0] : memref<8x16xf32, #tpu.memory_space<vmem>>, vector<8x16xf32>
    %c0_1 = arith.constant 0 : index
    %c0_2 = arith.constant 0 : index
    %1 = vector.load %arg4[%c0_1, %c0_2] : memref<16x8xf32, #tpu.memory_space<vmem>>, vector<16x8xf32>
    %c0_3 = arith.constant 0 : index
    %c0_4 = arith.constant 0 : index
    %c0_5 = arith.constant 0 : index
    %2 = vector.load %arg2[%c0_3, %c0_4, %c0_5] : memref<1x64x16xf32, #tpu.memory_space<vmem>>, vector<1x16x16xf32>
    %3 = vector.shape_cast %2 : vector<1x16x16xf32> to vector<16x16xf32>
    %cst = arith.constant dense<0.000000e+00> : vector<16x8xf32>
    %4 = tpu.matmul %3, %1, %cst {dimension_numbers = #tpu.dot_dimension_numbers<[1], [0], [0], [1], [0, 0, 1, 1], [], []>} : vector<16x16xf32>, vector<16x8xf32>, vector<16x8xf32> -> vector<16x8xf32>
    %cst_6 = arith.constant dense<0.000000e+00> : vector<8x8xf32>
    %5 = tpu.matmul %0, %4, %cst_6 {dimension_numbers = #tpu.dot_dimension_numbers<[1], [0], [0], [1], [0, 0, 1, 1], [], []>} : vector<8x16xf32>, vector<16x8xf32>, vector<8x8xf32> -> vector<8x8xf32>
    %c0_7 = arith.constant 0 : index
    %c16 = arith.constant 16 : index
    %c0_8 = arith.constant 0 : index
    %6 = vector.load %arg2[%c0_7, %c16, %c0_8] : memref<1x64x16xf32, #tpu.memory_space<vmem>>, vector<1x16x16xf32>
    %7 = vector.shape_cast %6 : vector<1x16x16xf32> to vector<16x16xf32>
    %cst_9 = arith.constant dense<0.000000e+00> : vector<16x8xf32>
    %8 = tpu.matmul %7, %1, %cst_9 {dimension_numbers = #tpu.dot_dimension_numbers<[1], [0], [0], [1], [0, 0, 1, 1], [], []>} : vector<16x16xf32>, vector<16x8xf32>, vector<16x8xf32> -> vector<16x8xf32>
    %cst_10 = arith.constant dense<0.000000e+00> : vector<8x8xf32>
    %9 = tpu.matmul %0, %8, %cst_10 {dimension_numbers = #tpu.dot_dimension_numbers<[1], [0], [0], [1], [0, 0, 1, 1], [], []>} : vector<8x16xf32>, vector<16x8xf32>, vector<8x8xf32> -> vector<8x8xf32>
    %c0_11 = arith.constant 0 : index
    %c32 = arith.constant 32 : index
    %c0_12 = arith.constant 0 : index
    %10 = vector.load %arg2[%c0_11, %c32, %c0_12] : memref<1x64x16xf32, #tpu.memory_space<vmem>>, vector<1x16x16xf32>
    %11 = vector.shape_cast %10 : vector<1x16x16xf32> to vector<16x16xf32>
    %cst_13 = arith.constant dense<0.000000e+00> : vector<16x8xf32>
    %12 = tpu.matmul %11, %1, %cst_13 {dimension_numbers = #tpu.dot_dimension_numbers<[1], [0], [0], [1], [0, 0, 1, 1], [], []>} : vector<16x16xf32>, vector<16x8xf32>, vector<16x8xf32> -> vector<16x8xf32>
    %cst_14 = arith.constant dense<0.000000e+00> : vector<8x8xf32>
    %13 = tpu.matmul %0, %12, %cst_14 {dimension_numbers = #tpu.dot_dimension_numbers<[1], [0], [0], [1], [0, 0, 1, 1], [], []>} : vector<8x16xf32>, vector<16x8xf32>, vector<8x8xf32> -> vector<8x8xf32>
    %c0_15 = arith.constant 0 : index
    %c48 = arith.constant 48 : index
    %c0_16 = arith.constant 0 : index
    %14 = vector.load %arg2[%c0_15, %c48, %c0_16] : memref<1x64x16xf32, #tpu.memory_space<vmem>>, vector<1x16x16xf32>
    %15 = vector.shape_cast %14 : vector<1x16x16xf32> to vector<16x16xf32>
    %cst_17 = arith.constant dense<0.000000e+00> : vector<16x8xf32>
    %16 = tpu.matmul %15, %1, %cst_17 {dimension_numbers = #tpu.dot_dimension_numbers<[1], [0], [0], [1], [0, 0, 1, 1], [], []>} : vector<16x16xf32>, vector<16x8xf32>, vector<16x8xf32> -> vector<16x8xf32>
    %cst_18 = arith.constant dense<0.000000e+00> : vector<8x8xf32>
    %17 = tpu.matmul %0, %16, %cst_18 {dimension_numbers = #tpu.dot_dimension_numbers<[1], [0], [0], [1], [0, 0, 1, 1], [], []>} : vector<8x16xf32>, vector<16x8xf32>, vector<8x8xf32> -> vector<8x8xf32>
    %c0_19 = arith.constant 0 : index
    %c0_20 = arith.constant 0 : index
    %18 = memref.load %arg5[%c0_19, %c0_20] : memref<8x4xf32, #tpu.memory_space<smem>>
    %19 = vector.broadcast %18 : f32 to vector<8x8xf32>
    %20 = arith.mulf %19, %5 : vector<8x8xf32>
    %c0_21 = arith.constant 0 : index
    %c1 = arith.constant 1 : index
    %21 = memref.load %arg5[%c0_21, %c1] : memref<8x4xf32, #tpu.memory_space<smem>>
    %22 = vector.broadcast %21 : f32 to vector<8x8xf32>
    %23 = arith.mulf %22, %9 : vector<8x8xf32>
    %24 = arith.addf %20, %23 : vector<8x8xf32>
    %c0_22 = arith.constant 0 : index
    %c2 = arith.constant 2 : index
    %25 = memref.load %arg5[%c0_22, %c2] : memref<8x4xf32, #tpu.memory_space<smem>>
    %26 = vector.broadcast %25 : f32 to vector<8x8xf32>
    %27 = arith.mulf %26, %13 : vector<8x8xf32>
    %28 = arith.addf %24, %27 : vector<8x8xf32>
    %c0_23 = arith.constant 0 : index
    %c3 = arith.constant 3 : index
    %29 = memref.load %arg5[%c0_23, %c3] : memref<8x4xf32, #tpu.memory_space<smem>>
    %30 = vector.broadcast %29 : f32 to vector<8x8xf32>
    %31 = arith.mulf %30, %17 : vector<8x8xf32>
    %32 = arith.addf %28, %31 : vector<8x8xf32>
    %c0_24 = arith.constant 0 : index
    %c0_25 = arith.constant 0 : index
    %c0_26 = arith.constant 0 : index
    %33 = vector.load %arg6[%c0_24, %c0_25, %c0_26] : memref<1x64x8xf32, #tpu.memory_space<vmem>>, vector<1x8x8xf32>
    %34 = vector.shape_cast %33 : vector<1x8x8xf32> to vector<8x8xf32>
    %35 = vector.shape_cast %32 : vector<8x8xf32> to vector<1x8x8xf32>
    tpu.vector_store %arg6[%c0_24, %c0_25, %c0_26], %35 {strides = array<i32>} : memref<1x64x8xf32, #tpu.memory_space<vmem>>, vector<1x8x8xf32>,
    %c1_27 = arith.constant 1 : index
    %c0_28 = arith.constant 0 : index
    %36 = memref.load %arg5[%c1_27, %c0_28] : memref<8x4xf32, #tpu.memory_space<smem>>
    %37 = vector.broadcast %36 : f32 to vector<8x8xf32>
    %38 = arith.mulf %37, %5 : vector<8x8xf32>
    %c1_29 = arith.constant 1 : index
    %c1_30 = arith.constant 1 : index
    %39 = memref.load %arg5[%c1_29, %c1_30] : memref<8x4xf32, #tpu.memory_space<smem>>
    %40 = vector.broadcast %39 : f32 to vector<8x8xf32>
    %41 = arith.mulf %40, %9 : vector<8x8xf32>
    %42 = arith.addf %38, %41 : vector<8x8xf32>
    %c1_31 = arith.constant 1 : index
    %c2_32 = arith.constant 2 : index
    %43 = memref.load %arg5[%c1_31, %c2_32] : memref<8x4xf32, #tpu.memory_space<smem>>
    %44 = vector.broadcast %43 : f32 to vector<8x8xf32>
    %45 = arith.mulf %44, %13 : vector<8x8xf32>
    %46 = arith.addf %42, %45 : vector<8x8xf32>
    %c1_33 = arith.constant 1 : index
    %c3_34 = arith.constant 3 : index
    %47 = memref.load %arg5[%c1_33, %c3_34] : memref<8x4xf32, #tpu.memory_space<smem>>
    %48 = vector.broadcast %47 : f32 to vector<8x8xf32>
    %49 = arith.mulf %48, %17 : vector<8x8xf32>
    %50 = arith.addf %46, %49 : vector<8x8xf32>
    %c0_35 = arith.constant 0 : index
    %c8 = arith.constant 8 : index
    %c0_36 = arith.constant 0 : index
    %51 = vector.load %arg6[%c0_35, %c8, %c0_36] : memref<1x64x8xf32, #tpu.memory_space<vmem>>, vector<1x8x8xf32>
    %52 = vector.shape_cast %51 : vector<1x8x8xf32> to vector<8x8xf32>
    %53 = vector.shape_cast %50 : vector<8x8xf32> to vector<1x8x8xf32>
    tpu.vector_store %arg6[%c0_35, %c8, %c0_36], %53 {strides = array<i32>} : memref<1x64x8xf32, #tpu.memory_space<vmem>>, vector<1x8x8xf32>,
    %c2_37 = arith.constant 2 : index
    %c0_38 = arith.constant 0 : index
    %54 = memref.load %arg5[%c2_37, %c0_38] : memref<8x4xf32, #tpu.memory_space<smem>>
    %55 = vector.broadcast %54 : f32 to vector<8x8xf32>
    %56 = arith.mulf %55, %5 : vector<8x8xf32>
    %c2_39 = arith.constant 2 : index
    %c1_40 = arith.constant 1 : index
    %57 = memref.load %arg5[%c2_39, %c1_40] : memref<8x4xf32, #tpu.memory_space<smem>>
    %58 = vector.broadcast %57 : f32 to vector<8x8xf32>
    %59 = arith.mulf %58, %9 : vector<8x8xf32>
    %60 = arith.addf %56, %59 : vector<8x8xf32>
    %c2_41 = arith.constant 2 : index
    %c2_42 = arith.constant 2 : index
    %61 = memref.load %arg5[%c2_41, %c2_42] : memref<8x4xf32, #tpu.memory_space<smem>>
    %62 = vector.broadcast %61 : f32 to vector<8x8xf32>
    %63 = arith.mulf %62, %13 : vector<8x8xf32>
    %64 = arith.addf %60, %63 : vector<8x8xf32>
    %c2_43 = arith.constant 2 : index
    %c3_44 = arith.constant 3 : index
    %65 = memref.load %arg5[%c2_43, %c3_44] : memref<8x4xf32, #tpu.memory_space<smem>>
    %66 = vector.broadcast %65 : f32 to vector<8x8xf32>
    %67 = arith.mulf %66, %17 : vector<8x8xf32>
    %68 = arith.addf %64, %67 : vector<8x8xf32>
    %c0_45 = arith.constant 0 : index
    %c16_46 = arith.constant 16 : index
    %c0_47 = arith.constant 0 : index
    %69 = vector.load %arg6[%c0_45, %c16_46, %c0_47] : memref<1x64x8xf32, #tpu.memory_space<vmem>>, vector<1x8x8xf32>
    %70 = vector.shape_cast %69 : vector<1x8x8xf32> to vector<8x8xf32>
    %71 = vector.shape_cast %68 : vector<8x8xf32> to vector<1x8x8xf32>
    tpu.vector_store %arg6[%c0_45, %c16_46, %c0_47], %71 {strides = array<i32>} : memref<1x64x8xf32, #tpu.memory_space<vmem>>, vector<1x8x8xf32>,
    %c3_48 = arith.constant 3 : index
    %c0_49 = arith.constant 0 : index
    %72 = memref.load %arg5[%c3_48, %c0_49] : memref<8x4xf32, #tpu.memory_space<smem>>
    %73 = vector.broadcast %72 : f32 to vector<8x8xf32>
    %74 = arith.mulf %73, %5 : vector<8x8xf32>
    %c3_50 = arith.constant 3 : index
    %c1_51 = arith.constant 1 : index
    %75 = memref.load %arg5[%c3_50, %c1_51] : memref<8x4xf32, #tpu.memory_space<smem>>
    %76 = vector.broadcast %75 : f32 to vector<8x8xf32>
    %77 = arith.mulf %76, %9 : vector<8x8xf32>
    %78 = arith.addf %74, %77 : vector<8x8xf32>
    %c3_52 = arith.constant 3 : index
    %c2_53 = arith.constant 2 : index
    %79 = memref.load %arg5[%c3_52, %c2_53] : memref<8x4xf32, #tpu.memory_space<smem>>
    %80 = vector.broadcast %79 : f32 to vector<8x8xf32>
    %81 = arith.mulf %80, %13 : vector<8x8xf32>
    %82 = arith.addf %78, %81 : vector<8x8xf32>
    %c3_54 = arith.constant 3 : index
    %c3_55 = arith.constant 3 : index
    %83 = memref.load %arg5[%c3_54, %c3_55] : memref<8x4xf32, #tpu.memory_space<smem>>
    %84 = vector.broadcast %83 : f32 to vector<8x8xf32>
    %85 = arith.mulf %84, %17 : vector<8x8xf32>
    %86 = arith.addf %82, %85 : vector<8x8xf32>
    %c0_56 = arith.constant 0 : index
    %c24 = arith.constant 24 : index
    %c0_57 = arith.constant 0 : index
    %87 = vector.load %arg6[%c0_56, %c24, %c0_57] : memref<1x64x8xf32, #tpu.memory_space<vmem>>, vector<1x8x8xf32>
    %88 = vector.shape_cast %87 : vector<1x8x8xf32> to vector<8x8xf32>
    %89 = vector.shape_cast %86 : vector<8x8xf32> to vector<1x8x8xf32>
    tpu.vector_store %arg6[%c0_56, %c24, %c0_57], %89 {strides = array<i32>} : memref<1x64x8xf32, #tpu.memory_space<vmem>>, vector<1x8x8xf32>,
    %c4 = arith.constant 4 : index
    %c0_58 = arith.constant 0 : index
    %90 = memref.load %arg5[%c4, %c0_58] : memref<8x4xf32, #tpu.memory_space<smem>>
    %91 = vector.broadcast %90 : f32 to vector<8x8xf32>
    %92 = arith.mulf %91, %5 : vector<8x8xf32>
    %c4_59 = arith.constant 4 : index
    %c1_60 = arith.constant 1 : index
    %93 = memref.load %arg5[%c4_59, %c1_60] : memref<8x4xf32, #tpu.memory_space<smem>>
    %94 = vector.broadcast %93 : f32 to vector<8x8xf32>
    %95 = arith.mulf %94, %9 : vector<8x8xf32>
    %96 = arith.addf %92, %95 : vector<8x8xf32>
    %c4_61 = arith.constant 4 : index
    %c2_62 = arith.constant 2 : index
    %97 = memref.load %arg5[%c4_61, %c2_62] : memref<8x4xf32, #tpu.memory_space<smem>>
    %98 = vector.broadcast %97 : f32 to vector<8x8xf32>
    %99 = arith.mulf %98, %13 : vector<8x8xf32>
    %100 = arith.addf %96, %99 : vector<8x8xf32>
    %c4_63 = arith.constant 4 : index
    %c3_64 = arith.constant 3 : index
    %101 = memref.load %arg5[%c4_63, %c3_64] : memref<8x4xf32, #tpu.memory_space<smem>>
    %102 = vector.broadcast %101 : f32 to vector<8x8xf32>
    %103 = arith.mulf %102, %17 : vector<8x8xf32>
    %104 = arith.addf %100, %103 : vector<8x8xf32>
    %c0_65 = arith.constant 0 : index
    %c32_66 = arith.constant 32 : index
    %c0_67 = arith.constant 0 : index
    %105 = vector.load %arg6[%c0_65, %c32_66, %c0_67] : memref<1x64x8xf32, #tpu.memory_space<vmem>>, vector<1x8x8xf32>
    %106 = vector.shape_cast %105 : vector<1x8x8xf32> to vector<8x8xf32>
    %107 = vector.shape_cast %104 : vector<8x8xf32> to vector<1x8x8xf32>
    tpu.vector_store %arg6[%c0_65, %c32_66, %c0_67], %107 {strides = array<i32>} : memref<1x64x8xf32, #tpu.memory_space<vmem>>, vector<1x8x8xf32>,
    %c5 = arith.constant 5 : index
    %c0_68 = arith.constant 0 : index
    %108 = memref.load %arg5[%c5, %c0_68] : memref<8x4xf32, #tpu.memory_space<smem>>
    %109 = vector.broadcast %108 : f32 to vector<8x8xf32>
    %110 = arith.mulf %109, %5 : vector<8x8xf32>
    %c5_69 = arith.constant 5 : index
    %c1_70 = arith.constant 1 : index
    %111 = memref.load %arg5[%c5_69, %c1_70] : memref<8x4xf32, #tpu.memory_space<smem>>
    %112 = vector.broadcast %111 : f32 to vector<8x8xf32>
    %113 = arith.mulf %112, %9 : vector<8x8xf32>
    %114 = arith.addf %110, %113 : vector<8x8xf32>
    %c5_71 = arith.constant 5 : index
    %c2_72 = arith.constant 2 : index
    %115 = memref.load %arg5[%c5_71, %c2_72] : memref<8x4xf32, #tpu.memory_space<smem>>
    %116 = vector.broadcast %115 : f32 to vector<8x8xf32>
    %117 = arith.mulf %116, %13 : vector<8x8xf32>
    %118 = arith.addf %114, %117 : vector<8x8xf32>
    %c5_73 = arith.constant 5 : index
    %c3_74 = arith.constant 3 : index
    %119 = memref.load %arg5[%c5_73, %c3_74] : memref<8x4xf32, #tpu.memory_space<smem>>
    %120 = vector.broadcast %119 : f32 to vector<8x8xf32>
    %121 = arith.mulf %120, %17 : vector<8x8xf32>
    %122 = arith.addf %118, %121 : vector<8x8xf32>
    %c0_75 = arith.constant 0 : index
    %c40 = arith.constant 40 : index
    %c0_76 = arith.constant 0 : index
    %123 = vector.load %arg6[%c0_75, %c40, %c0_76] : memref<1x64x8xf32, #tpu.memory_space<vmem>>, vector<1x8x8xf32>
    %124 = vector.shape_cast %123 : vector<1x8x8xf32> to vector<8x8xf32>
    %125 = vector.shape_cast %122 : vector<8x8xf32> to vector<1x8x8xf32>
    tpu.vector_store %arg6[%c0_75, %c40, %c0_76], %125 {strides = array<i32>} : memref<1x64x8xf32, #tpu.memory_space<vmem>>, vector<1x8x8xf32>,
    %c6 = arith.constant 6 : index
    %c0_77 = arith.constant 0 : index
    %126 = memref.load %arg5[%c6, %c0_77] : memref<8x4xf32, #tpu.memory_space<smem>>
    %127 = vector.broadcast %126 : f32 to vector<8x8xf32>
    %128 = arith.mulf %127, %5 : vector<8x8xf32>
    %c6_78 = arith.constant 6 : index
    %c1_79 = arith.constant 1 : index
    %129 = memref.load %arg5[%c6_78, %c1_79] : memref<8x4xf32, #tpu.memory_space<smem>>
    %130 = vector.broadcast %129 : f32 to vector<8x8xf32>
    %131 = arith.mulf %130, %9 : vector<8x8xf32>
    %132 = arith.addf %128, %131 : vector<8x8xf32>
    %c6_80 = arith.constant 6 : index
    %c2_81 = arith.constant 2 : index
    %133 = memref.load %arg5[%c6_80, %c2_81] : memref<8x4xf32, #tpu.memory_space<smem>>
    %134 = vector.broadcast %133 : f32 to vector<8x8xf32>
    %135 = arith.mulf %134, %13 : vector<8x8xf32>
    %136 = arith.addf %132, %135 : vector<8x8xf32>
    %c6_82 = arith.constant 6 : index
    %c3_83 = arith.constant 3 : index
    %137 = memref.load %arg5[%c6_82, %c3_83] : memref<8x4xf32, #tpu.memory_space<smem>>
    %138 = vector.broadcast %137 : f32 to vector<8x8xf32>
    %139 = arith.mulf %138, %17 : vector<8x8xf32>
    %140 = arith.addf %136, %139 : vector<8x8xf32>
    %c0_84 = arith.constant 0 : index
    %c48_85 = arith.constant 48 : index
    %c0_86 = arith.constant 0 : index
    %141 = vector.load %arg6[%c0_84, %c48_85, %c0_86] : memref<1x64x8xf32, #tpu.memory_space<vmem>>, vector<1x8x8xf32>
    %142 = vector.shape_cast %141 : vector<1x8x8xf32> to vector<8x8xf32>
    %143 = vector.shape_cast %140 : vector<8x8xf32> to vector<1x8x8xf32>
    tpu.vector_store %arg6[%c0_84, %c48_85, %c0_86], %143 {strides = array<i32>} : memref<1x64x8xf32, #tpu.memory_space<vmem>>, vector<1x8x8xf32>,
    %c7 = arith.constant 7 : index
    %c0_87 = arith.constant 0 : index
    %144 = memref.load %arg5[%c7, %c0_87] : memref<8x4xf32, #tpu.memory_space<smem>>
    %145 = vector.broadcast %144 : f32 to vector<8x8xf32>
    %146 = arith.mulf %145, %5 : vector<8x8xf32>
    %c7_88 = arith.constant 7 : index
    %c1_89 = arith.constant 1 : index
    %147 = memref.load %arg5[%c7_88, %c1_89] : memref<8x4xf32, #tpu.memory_space<smem>>
    %148 = vector.broadcast %147 : f32 to vector<8x8xf32>
    %149 = arith.mulf %148, %9 : vector<8x8xf32>
    %150 = arith.addf %146, %149 : vector<8x8xf32>
    %c7_90 = arith.constant 7 : index
    %c2_91 = arith.constant 2 : index
    %151 = memref.load %arg5[%c7_90, %c2_91] : memref<8x4xf32, #tpu.memory_space<smem>>
    %152 = vector.broadcast %151 : f32 to vector<8x8xf32>
    %153 = arith.mulf %152, %13 : vector<8x8xf32>
    %154 = arith.addf %150, %153 : vector<8x8xf32>
    %c7_92 = arith.constant 7 : index
    %c3_93 = arith.constant 3 : index
    %155 = memref.load %arg5[%c7_92, %c3_93] : memref<8x4xf32, #tpu.memory_space<smem>>
    %156 = vector.broadcast %155 : f32 to vector<8x8xf32>
    %157 = arith.mulf %156, %17 : vector<8x8xf32>
    %158 = arith.addf %154, %157 : vector<8x8xf32>
    %c0_94 = arith.constant 0 : index
    %c56 = arith.constant 56 : index
    %c0_95 = arith.constant 0 : index
    %159 = vector.load %arg6[%c0_94, %c56, %c0_95] : memref<1x64x8xf32, #tpu.memory_space<vmem>>, vector<1x8x8xf32>
    %160 = vector.shape_cast %159 : vector<1x8x8xf32> to vector<8x8xf32>
    %161 = vector.shape_cast %158 : vector<8x8xf32> to vector<1x8x8xf32>
    tpu.vector_store %arg6[%c0_94, %c56, %c0_95], %161 {strides = array<i32>} : memref<1x64x8xf32, #tpu.memory_space<vmem>>, vector<1x8x8xf32>,
    return
  }
  func.func @transform_0(%arg0: i32, %arg1: i32) -> (i32, i32, i32) {
    %c0_i32 = arith.constant 0 : i32
    %c0_i32_0 = arith.constant 0 : i32
    %c0_i32_1 = arith.constant 0 : i32
    return %arg0, %c0_i32, %c0_i32_0 : i32, i32, i32
  }
  func.func @transform_1(%arg0: i32, %arg1: i32) -> (i32, i32) {
    %c0_i32 = arith.constant 0 : i32
    %c0_i32_0 = arith.constant 0 : i32
    %c0_i32_1 = arith.constant 0 : i32
    return %c0_i32, %c0_i32_0 : i32, i32
  }
  func.func @transform_2(%arg0: i32, %arg1: i32) -> (i32, i32) {
    %c0_i32 = arith.constant 0 : i32
    %c0_i32_0 = arith.constant 0 : i32
    return %c0_i32, %arg1 : i32, i32
  }
  func.func @transform_3(%arg0: i32, %arg1: i32) -> (i32, i32) {
    %c0_i32 = arith.constant 0 : i32
    %c0_i32_0 = arith.constant 0 : i32
    %c0_i32_1 = arith.constant 0 : i32
    return %c0_i32, %c0_i32_0 : i32, i32
  }
  func.func @transform_4(%arg0: i32, %arg1: i32) -> (i32, i32, i32) {
    %c0_i32 = arith.constant 0 : i32
    %c0_i32_0 = arith.constant 0 : i32
    return %arg0, %c0_i32, %arg1 : i32, i32, i32
  }
}

</mosaic_0001>

<bundles_post_ra>
// kernel: tpu_custom_call.1
= control target key start
LH: loop header
LB: loop body
LE: loop exit
PB: predicated region body
PF: predicated region fallthrough
CT: control target
= control target key end

     0   :  { %s1548_s0 = inlined_call_operand.vmem [shape: f32[2,64,16], index: 0, kind: input, shape index: {}]   ;;  %s1549_s1 = inlined_call_operand.vmem [shape: f32[8,16], index: 1, kind: input, shape index: {}]   ;;  %s1550_s2 = inlined_call_operand.vmem [shape: f32[16,8], index: 2, kind: input, shape index: {}]   ;;  %s1551_s3 = inlined_call_operand.vmem [shape: f32[8,4], index: 3, kind: input, shape index: {}]   ;;  %s1552_s4 = inlined_call_operand.vmem [shape: f32[2,64,8], index: 4, kind: output, shape index: {}]  }
   0x1   :  { %1557 = sst [smem:[#allocation11_spill]] %s1548_s0 }
   0x2   :  { %1558 = sst [smem:[#allocation12_spill]] %s1549_s1 }
   0x3   :  { %1559 = sst [smem:[#allocation13_spill]] %s1550_s2 }
   0x4   :  { %1560 = sst [smem:[#allocation14_spill]] %s1551_s3 }
   0x5   :  { %1561 = sst [smem:[#allocation15_spill]] %s1552_s4 }
   0x6   :  { %9 = vsyncpa [#allocation3], 0  ;;  %s1353_s15 = smov 0   ;;  %s1355_s16 = smov 0  }
   0x7   :  { %s1357_s17 = smov 0  }
   0x8 LB: > { %1562 = sst [smem:[#allocation5_spill]] %s1319_s16  ;;  %s1102_s18 = sadd.s32 4294967295, %s1323_s17   ;;  %s1323_s17 = sphi %s1357_s17, %s15_s17   ;;  %s1319_s16 = sphi %s1355_s16, %s1581_s16   ;;  %s1315_s15 = sphi %s1353_s15, %s1580_s15  }
   0x9   : > { %1563 = sst [smem:[#allocation6_spill]] %s1323_s17  ;;  %s27_s19 = sadd.s32 1, %s1319_s16 }
   0xa   : > { %p29_p0 = scmp.ge.s32.totalorder %s27_s19, 2  ;;  %p1104_p1 = scmp.ge.s32.totalorder %s1323_s17, 1 }
   0xb   : > { %p154_p2 = scmp.lt.s32.totalorder %s1323_s17, 3  ;;  %p1378_p4 = scmp.eq.s32.totalorder %s1102_s18, 0 }
   0xc   : > { %s1583_s19 = smov (%p29_p0, %s27_s19), 0  ;;  %s1567_s3 = sld [smem:[#allocation14_spill]] }
   0xd   : > { %1564 = sst [smem:[#allocation7_spill]] %s1583_s19  ;;  %p1374_p3 = pnand %p1104_p1, %p154_p2 }
   0xf   : > { %p1249_p5 = pneg %p1374_p3 }
  0x11   : > { %p1250_p6 = pnand %p1378_p4, %p1249_p5 }
  0x12   : > { %s177_s24 = sshll.u32 %s1567_s3, 4  ;;  %s178_s24 = int_to_ptr.vmem [resolvable:$true] %s177_s24 }
  0x13   : > { %s1282_s25 = scalar_lea.vmem %s178_s24, 128  ;;  %p1284_p8 = pneg %p1250_p6 }
  0x14   : > { %p1283_p7 = scmp.ne.s32.totalorder %s178_s24, %s1282_s25  ;;  %p1290_p11 = scmp.lt.s32.totalorder %s178_s24, %s178_s24 }
  0x15   : > { %p1291_p12 = scmp.lt.s32.totalorder %s1282_s25, %s1282_s25 }
  0x16   : > { %p1285_p9 = pnand %p1284_p8, %p1283_p7 }
  0x17   : > { %p1292_p13 = por %p1291_p12, %p1290_p11 }
  0x18   : > { %p1286_p10 = pneg %p1285_p9 }
  0x1a   : > { %p1293_p0 = pnand %p1292_p13, %p1286_p10 }
  0x1c   : > { %1296 = shalt.err (!%p1293_p0)
}
  0x1d   : > { %s1325_s26 = smov [#allocation2]   ;;  %198 = sbr.rel (%p1374_p3) target bundleno = 457 (0x1c9), region = 36 }
  0x1e   : > { %1252 = dma.vmem_to_smem (!%p1250_p6), %s178_s24, 128, %s1325_s26, [#allocation3]  }
  0x22   : > { %1310 = dma.done.wait (%p1378_p4), [#allocation3], 128  }
  0x23   : > { %1312 = vsyncadd (%p1378_p4), [#allocation3], 4294967168 }
  0x24   : > { %204 = sfence }
  0x25   : > { %s1568_s2 = sld [smem:[#allocation13_spill]]  ;;  %p232_p1 = scmp.lt.s32.totalorder %s1315_s15, 1  ;;  %vm254_vm0 = vcmask 130048   ;;  %v1326_v10 = vmov 0.0   ;;  %vm1327_vm1 = vmmov 0   ;;  %vm883_vm2 = vcmask 64512  }
  0x26   : > { %s1570_s0 = sld [smem:[#allocation11_spill]]  ;;  %1196 = vmatprep.subr.mxu1 %v1326_v10  ;;  %1200 = vmatprep.mubr.msk.f32.mxu1 %vm1327_vm1, %v1326_v10 }
  0x27   : > { %s1585_s15 = smov (!%p232_p1, %s1315_s15), 1  ;;  %s1571_s1 = sld [smem:[#allocation12_spill]] }
  0x28   : > { %1569 = sst [smem:[#allocation8_spill]] %s1585_s15  ;;  %s1553_s5 = sshll.u32 %s1585_s15, 6 }
  0x29   : > { %s1430_s11 = sld [smem:[#allocation2]] }
  0x2a   : > { %s1432_s12 = sld [smem:[#allocation2 + $0x80]] }
  0x2b   : > { %v251_v0 = vld [vmem:[%s1568_s2 + $0x8] sm:$0xff]  ;;  %v250_v1 = vld [vmem:[%s1568_s2] sm:$0xff]  ;;  %s1434_s13 = sld [smem:[#allocation2 + $0x100]] }
  0x2c   : > { %1189 = vmatprep.subr.mxu0 %v251_v0  ;;  %s236_s8 = scalar_lea.vmem %s1570_s0, %s1553_s5  ;;  %s1436_s14 = sld [smem:[#allocation2 + $0x180]] }
  0x2d   : > { %1190 = vmatpush3.msra.mxu0 %v251_v0  ;;  %v252_v2 = vld [vmem:[%s236_s8] sm:$0xff]  ;;  %v253_v3 = vld [vmem:[%s236_s8 + $0x8] sm:$0xff]  ;;  %v409_v4 = vld [vmem:[%s236_s8 + $0x10] sm:$0xff]  ;;  %s1438_s18 = sld [smem:[#allocation2 + $0x200]] }
  0x2e   : > { %1191 = vmatprep.subr.mxu0 %v250_v1  ;;  %1193 = vmatprep.mubr.msk.f32.mxu0 %vm254_vm0, %v252_v2  ;;  %v410_v5 = vld [vmem:[%s236_s8 + $0x18] sm:$0xff]  ;;  %v562_v6 = vld [vmem:[%s236_s8 + $0x20] sm:$0xff]  ;;  %v563_v7 = vld [vmem:[%s236_s8 + $0x28] sm:$0xff]  ;;  %s1440_s20 = sld [smem:[#allocation2 + $0x280]] }
  0x2f   : > { %1192 = vmatpush3.msra.mxu0 %v250_v1  ;;  %v715_v8 = vld [vmem:[%s236_s8 + $0x30] sm:$0xff]  ;;  %v716_v9 = vld [vmem:[%s236_s8 + $0x38] sm:$0xff]  ;;  %v249_v12 = vld [vmem:[%s1571_s1] sm:$0xff]  ;;  %s1442_s21 = sld [smem:[#allocation2 + $0x300]]  ;;  %v869_v20 = vstv %s1430_s11 }
  0x30   : > { %1203 = vmatprep.subr.mxu0 %v251_v0  ;;  %1194 = vmatmul.mubr.msk.f32.vlgmr.msra.gmra.mxu0 %vm254_vm0, %v253_v3  ;;  %s1444_s22 = sld [smem:[#allocation2 + $0x380]]  ;;  %v886_v21 = vstv %s1432_s12 }
  0x31   : > { %1204 = vmatpush3.msra.mxu0 %v251_v0  ;;  %1207 = vmatprep.mubr.msk.f32.mxu0 %vm254_vm0, %v409_v4  ;;  %s1446_s23 = sld [smem:[#allocation2 + $0x1]]  ;;  %v902_v22 = vstv %s1434_s13 }
  0x32   : > { %1205 = vmatprep.subr.mxu0 %v250_v1  ;;  %s1448_s24 = sld [smem:[#allocation2 + $0x81]]  ;;  %v918_v23 = vstv %s1436_s14 }
  0x33   : > { %1206 = vmatpush3.msra.mxu0 %v250_v1  ;;  %s1450_s25 = sld [smem:[#allocation2 + $0x101]]  ;;  %v934_v24 = vstv %s1438_s18 }
  0x34   : > { %1208 = vmatmul.mubr.msk.f32.vlgmr.msra.gmra.mxu0 %vm254_vm0, %v410_v5  ;;  %1217 = vmatprep.subr.mxu0 %v251_v0  ;;  %s1452_s26 = sld [smem:[#allocation2 + $0x181]]  ;;  %v950_v25 = vstv %s1440_s20 }
  0x35   : > { %1218 = vmatpush3.msra.mxu0 %v251_v0  ;;  %1221 = vmatprep.mubr.msk.f32.mxu0 %vm254_vm0, %v562_v6  ;;  %s1454_s27 = sld [smem:[#allocation2 + $0x201]]  ;;  %v966_v26 = vstv %s1442_s21 }
  0x36   : > { %1219 = vmatprep.subr.mxu0 %v250_v1  ;;  %s1456_s28 = sld [smem:[#allocation2 + $0x281]]  ;;  %v982_v27 = vstv %s1444_s22 }
  0x37   : > { %1220 = vmatpush3.msra.mxu0 %v250_v1  ;;  %s1458_s29 = sld [smem:[#allocation2 + $0x301]]  ;;  %v872_v28 = vstv %s1446_s23 }
  0x38   : > { %1222 = vmatmul.mubr.msk.f32.vlgmr.msra.gmra.mxu0 %vm254_vm0, %v563_v7  ;;  %1231 = vmatprep.subr.mxu0 %v251_v0  ;;  %s1460_s30 = sld [smem:[#allocation2 + $0x381]]  ;;  %v889_v29 = vstv %s1448_s24 }
  0x39   : > { %1232 = vmatpush3.msra.mxu0 %v251_v0  ;;  %1235 = vmatprep.mubr.msk.f32.mxu0 %vm254_vm0, %v715_v8  ;;  %s1462_s6 = sld [smem:[#allocation2 + $0x2]]  ;;  %v905_v30 = vstv %s1450_s25 }
  0x3a   : > { %1233 = vmatprep.subr.mxu0 %v250_v1  ;;  %s1464_s7 = sld [smem:[#allocation2 + $0x82]]  ;;  %v921_v31 = vstv %s1452_s26 }
  0x3b   : > { %1234 = vmatpush3.msra.mxu0 %v250_v1  ;;  %s1466_s8 = sld [smem:[#allocation2 + $0x102]]  ;;  %v937_v32 = vstv %s1454_s27 }
  0x3c   : > { %1236 = vmatmul.mubr.msk.f32.vlgmr.msra.gmra.mxu0 %vm254_vm0, %v716_v9  ;;  %s1468_s9 = sld [smem:[#allocation2 + $0x182]]  ;;  %v953_v33 = vstv %s1456_s28 }
  0x3d   : > { %s1470_s10 = sld [smem:[#allocation2 + $0x202]]  ;;  %v969_v34 = vstv %s1458_s29 }
  0x3e   : > { %s1472_s5 = sld [smem:[#allocation2 + $0x282]]  ;;  %v985_v35 = vstv %s1460_s30 }
  0x3f   : > { %s1474_s0 = sld [smem:[#allocation2 + $0x302]]  ;;  %v876_v36 = vstv %s1462_s6 }
  0x40   : > { %s1476_s1 = sld [smem:[#allocation2 + $0x382]]  ;;  %v893_v37 = vstv %s1464_s7 }
  0x41   : > { %s1478_s2 = sld [smem:[#allocation2 + $0x3]]  ;;  %v909_v38 = vstv %s1466_s8 }
  0x42   : > { %s1480_s3 = sld [smem:[#allocation2 + $0x83]]  ;;  %v925_v39 = vstv %s1468_s9 }
  0x43   : > { %s1482_s19 = sld [smem:[#allocation2 + $0x103]]  ;;  %v941_v41 = vstv %s1470_s10 }
  0x44   : > { %s1484_s16 = sld [smem:[#allocation2 + $0x183]]  ;;  %v957_v42 = vstv %s1472_s5 }
  0x45   : > { %s1486_s17 = sld [smem:[#allocation2 + $0x203]]  ;;  %v973_v43 = vstv %s1474_s0 }
  0x46   : > { %s1488_s4 = sld [smem:[#allocation2 + $0x283]]  ;;  %v989_v44 = vstv %s1476_s1 }
  0x47   : > { %1572 = sst [smem:[#allocation9_spill]] %s1478_s2 }
  0x48   : > { %s1490_s15 = sld [smem:[#allocation2 + $0x303]]  ;;  %v897_v46 = vstv %s1480_s3 }
  0x49   : > { %s1492_s2 = sld [smem:[#allocation2 + $0x383]]  ;;  %v913_v47 = vstv %s1482_s19 }
  0x4a   : > { %v929_v48 = vstv %s1484_s16  ;;  %s1576_s0 = sld [smem:[#allocation8_spill]] }
  0x4b   : > { %v945_v50 = vstv %s1486_s17 }
  0x4c   : > { %v961_v51 = vstv %s1488_s4  ;;  %s1578_s4 = sld [smem:[#allocation15_spill]] }
  0x4e   : > { %v977_v52 = vstv %s1490_s15 }
  0x4f   : > { %1573 = sst [smem:[#allocation10_spill]] %s1492_s2 }
  0x50   : > { %s1574_s2 = sld [smem:[#allocation9_spill]]  ;;  %s1577_s1 = sshll.u32 %s1576_s0, 6 }
  0x51   : > { %s1575_s11 = sld [smem:[#allocation10_spill]] }
  0x52   : > { %s248_s15 = scalar_lea.vmem %s1578_s4, %s1577_s1 }
  0x56   : > { %v880_v45 = vstv %s1574_s2 }
  0x57   : > { %v993_v53 = vstv %s1575_s11 }
  0xf0   : > { %v1195_v11 = vpop.f32.mrf.mxu0 }
  0xf1   : > { %1197 = vmatpush3.msra.mxu1 %v1195_v11 }
  0xf2   : > { %v327_v13 = vpop.f32.mrf.mxu0  ;;  %1198 = vmatprep.subr.mxu1 %v1326_v10 }
  0xf3   : > { %1199 = vmatpush3.msra.mxu1 %v327_v13 }
  0xf4   : > { %1201 = vmatmul.mubr.msk.f32.vlgmr.msra.gmra.mxu1 %vm254_vm0, %v249_v12  ;;  %v1209_v14 = vpop.f32.mrf.mxu0  ;;  %1210 = vmatprep.subr.mxu1 %v1326_v10 }
  0xf5   : > { %1211 = vmatpush3.msra.mxu1 %v1209_v14  ;;  %1214 = vmatprep.mubr.msk.f32.mxu1 %vm1327_vm1, %v1326_v10 }
  0xf6   : > { %v483_v15 = vpop.f32.mrf.mxu0  ;;  %1212 = vmatprep.subr.mxu1 %v1326_v10 }
  0xf7   : > { %1213 = vmatpush3.msra.mxu1 %v483_v15 }
  0xf8   : > { %1215 = vmatmul.mubr.msk.f32.vlgmr.msra.gmra.mxu1 %vm254_vm0, %v249_v12  ;;  %v1223_v16 = vpop.f32.mrf.mxu0  ;;  %1224 = vmatprep.subr.mxu1 %v1326_v10 }
  0xf9   : > { %1225 = vmatpush3.msra.mxu1 %v1223_v16  ;;  %1228 = vmatprep.mubr.msk.f32.mxu1 %vm1327_vm1, %v1326_v10 }
  0xfa   : > { %v636_v17 = vpop.f32.mrf.mxu0  ;;  %1226 = vmatprep.subr.mxu1 %v1326_v10 }
  0xfb   : > { %1227 = vmatpush3.msra.mxu1 %v636_v17 }
  0xfc   : > { %1229 = vmatmul.mubr.msk.f32.vlgmr.msra.gmra.mxu1 %vm254_vm0, %v249_v12  ;;  %v1237_v18 = vpop.f32.mrf.mxu0  ;;  %1238 = vmatprep.subr.mxu1 %v1326_v10 }
  0xfd   : > { %1239 = vmatpush3.msra.mxu1 %v1237_v18  ;;  %1242 = vmatprep.mubr.msk.f32.mxu1 %vm1327_vm1, %v1326_v10 }
  0xfe   : > { %v789_v19 = vpop.f32.mrf.mxu0  ;;  %1240 = vmatprep.subr.mxu1 %v1326_v10 }
  0xff   : > { %1241 = vmatpush3.msra.mxu1 %v789_v19 }
 0x100   : > { %1243 = vmatmul.mubr.msk.f32.vlgmr.msra.gmra.mxu1 %vm254_vm0, %v249_v12 }
 0x1b4   : > { %v405_v40 = vpop.f32.mrf.mxu1 }
 0x1b5   : > { %v870_v54 = vmul.f32 %v869_v20, %v405_v40  ;;  %v887_v55 = vmul.f32 %v886_v21, %v405_v40  ;;  %v903_v56 = vmul.f32 %v902_v22, %v405_v40  ;;  %v919_v57 = vmul.f32 %v918_v23, %v405_v40 }
 0x1b6   : > { %v1202_v49 = vpop.f32.mrf.mxu1  ;;  %v935_v58 = vmul.f32 %v934_v24, %v405_v40  ;;  %v951_v59 = vmul.f32 %v950_v25, %v405_v40  ;;  %v967_v60 = vmul.f32 %v966_v26, %v405_v40  ;;  %v983_v61 = vmul.f32 %v982_v27, %v405_v40 }
 0x1b8   : > { %v558_v62 = vpop.f32.mrf.mxu1 }
 0x1b9   : > { %v873_v63 = vmul.f32 %v872_v28, %v558_v62  ;;  %v890_v0 = vmul.f32 %v889_v29, %v558_v62  ;;  %v906_v1 = vmul.f32 %v905_v30, %v558_v62  ;;  %v922_v2 = vmul.f32 %v921_v31, %v558_v62 }
 0x1ba   : > { %v938_v3 = vmul.f32 %v937_v32, %v558_v62  ;;  %v954_v4 = vmul.f32 %v953_v33, %v558_v62  ;;  %v970_v5 = vmul.f32 %v969_v34, %v558_v62  ;;  %v986_v6 = vmul.f32 %v985_v35, %v558_v62  ;;  %v1216_v7 = vpop.f32.mrf.mxu1 }
 0x1bb   : > { %v874_v8 = vadd.f32 %v873_v63, %v870_v54  ;;  %v891_v9 = vadd.f32 %v890_v0, %v887_v55  ;;  %v907_v10 = vadd.f32 %v906_v1, %v903_v56  ;;  %v923_v11 = vadd.f32 %v922_v2, %v919_v57 }
 0x1bc   : > { %v939_v12 = vadd.f32 %v938_v3, %v935_v58  ;;  %v955_v13 = vadd.f32 %v954_v4, %v951_v59  ;;  %v971_v14 = vadd.f32 %v970_v5, %v967_v60  ;;  %v987_v15 = vadd.f32 %v986_v6, %v983_v61  ;;  %v711_v16 = vpop.f32.mrf.mxu1 }
 0x1bd   : > { %v877_v17 = vmul.f32 %v876_v36, %v711_v16  ;;  %v894_v18 = vmul.f32 %v893_v37, %v711_v16  ;;  %v910_v19 = vmul.f32 %v909_v38, %v711_v16  ;;  %v926_v20 = vmul.f32 %v925_v39, %v711_v16 }
 0x1be   : > { %v942_v21 = vmul.f32 %v941_v41, %v711_v16  ;;  %v958_v22 = vmul.f32 %v957_v42, %v711_v16  ;;  %v974_v23 = vmul.f32 %v973_v43, %v711_v16  ;;  %v990_v24 = vmul.f32 %v989_v44, %v711_v16  ;;  %v1230_v25 = vpop.f32.mrf.mxu1 }
 0x1bf   : > { %v878_v26 = vadd.f32 %v877_v17, %v874_v8  ;;  %v895_v27 = vadd.f32 %v894_v18, %v891_v9  ;;  %v911_v28 = vadd.f32 %v910_v19, %v907_v10  ;;  %v927_v29 = vadd.f32 %v926_v20, %v923_v11 }
 0x1c0   : > { %v943_v30 = vadd.f32 %v942_v21, %v939_v12  ;;  %v959_v31 = vadd.f32 %v958_v22, %v955_v13  ;;  %v975_v32 = vadd.f32 %v974_v23, %v971_v14  ;;  %v991_v33 = vadd.f32 %v990_v24, %v987_v15  ;;  %v864_v34 = vpop.f32.mrf.mxu1 }
 0x1c1   : > { %v881_v35 = vmul.f32 %v880_v45, %v864_v34  ;;  %v898_v36 = vmul.f32 %v897_v46, %v864_v34  ;;  %v914_v37 = vmul.f32 %v913_v47, %v864_v34  ;;  %v930_v38 = vmul.f32 %v929_v48, %v864_v34 }
 0x1c2   : > { %v946_v39 = vmul.f32 %v945_v50, %v864_v34  ;;  %v962_v40 = vmul.f32 %v961_v51, %v864_v34  ;;  %v978_v41 = vmul.f32 %v977_v52, %v864_v34  ;;  %v994_v42 = vmul.f32 %v993_v53, %v864_v34  ;;  %v1244_v43 = vpop.f32.mrf.mxu1 }
 0x1c3   : > { %v882_v44 = vadd.f32 %v881_v35, %v878_v26  ;;  %v899_v49 = vadd.f32 %v898_v36, %v895_v27  ;;  %v915_v54 = vadd.f32 %v914_v37, %v911_v28  ;;  %v931_v55 = vadd.f32 %v930_v38, %v927_v29 }
 0x1c4   : > { %v947_v56 = vadd.f32 %v946_v39, %v943_v30  ;;  %v963_v57 = vadd.f32 %v962_v40, %v959_v31  ;;  %v979_v45 = vadd.f32 %v978_v41, %v975_v32  ;;  %v995_v46 = vadd.f32 %v994_v42, %v991_v33 }
 0x1c5   : > { %884 = vst.msk [vmem:[%s248_s15] sm:$0xff] %vm883_vm2, %v882_v44  ;;  %900 = vst.msk [vmem:[%s248_s15 + $0x8] sm:$0xff] %vm883_vm2, %v899_v49 }
 0x1c6   : > { %916 = vst.msk [vmem:[%s248_s15 + $0x10] sm:$0xff] %vm883_vm2, %v915_v54  ;;  %932 = vst.msk [vmem:[%s248_s15 + $0x18] sm:$0xff] %vm883_vm2, %v931_v55 }
 0x1c7   : > { %948 = vst.msk [vmem:[%s248_s15 + $0x20] sm:$0xff] %vm883_vm2, %v947_v56  ;;  %964 = vst.msk [vmem:[%s248_s15 + $0x28] sm:$0xff] %vm883_vm2, %v963_v57 }
 0x1c8   : > { %980 = vst.msk [vmem:[%s248_s15 + $0x30] sm:$0xff] %vm883_vm2, %v979_v45  ;;  %996 = vst.msk [vmem:[%s248_s15 + $0x38] sm:$0xff] %vm883_vm2, %v995_v46 }
 0x1c9 PF: > { %s1579_s16 = sld [smem:[#allocation6_spill]] }
 0x1ca   : > { %s1580_s15 = sld [smem:[#allocation5_spill]] }
 0x1cf   : > { %s15_s17 = sadd.s32 1, %s1579_s16   ;;  %s1581_s16 = sld [smem:[#allocation7_spill]] }
 0x1d0   : > { %p12_p2 = scmp.ge.s32.totalorder %s15_s17, 4  }
 0x1d2   :  { %14 = sbr.rel (!%p12_p2) target bundleno = 8 (0x8), region = 74 }
 0x1d7   :  { %1024 = vsyncpa [#allocation3], 1 }
 0x1d8   :  { %1026 = vsyncpa [#allocation3 + $0x1], 1 }

</bundles_post_ra>
